<compile_context>
chip_gen: v7x
topology: tpu7x:2x2x1
jax: 0.10.0
libtpu: 0.0.40
codegen_flags: <defaults>
</compile_context>

<pallas_src>
import functools
import math

import numpy as np
import jax
import jax.numpy as jnp
from jax import lax
from jax.experimental import pallas as pl
from jax.experimental.pallas import tpu as pltpu


# -----------------------------------------------------------------------------
# VMEM-budget aware tiling helpers
# -----------------------------------------------------------------------------
_DEF_VMEM_BUDGET = 12 * 1024 * 1024   # double-buffered feature stream budget


def _round_up(x, m):
    return ((x + m - 1) // m) * m


def _round_down(x, m):
    return (x // m) * m


def _lcm(a, b):
    return a * b // math.gcd(a, b)


def _choose_seq_tile(rows, H, L, elem_bytes, lane_align, budget):
    """Sequence (lane) tile for a (rows, H, lt) feature block (double-buffered)."""
    if 2 * rows * H * L * elem_bytes <= budget:
        return L, L                                   # single L tile, no padding
    lt = _round_down(budget // (2 * rows * H * elem_bytes), lane_align)
    lt = max(lane_align, lt)                          # never below one aligned tile
    lt = min(lt, _round_up(L, lane_align))
    return lt, _round_up(L, lt)


def _choose_batch_tile(B, row_bytes, budget, bt_cap=512):
    """Batch tile: multiple of 8, budget-bounded, balanced so padding is minimal."""
    bt = max(8, _round_down(budget // max(1, 2 * row_bytes), 8))
    bt = min(bt, bt_cap)
    bp8 = _round_up(B, 8)
    bt = min(bt, bp8)
    n_bt = -(-bp8 // bt)
    bt = _round_up(-(-bp8 // n_bt), 8)                # balanced tiles
    return bt, n_bt * bt


# -----------------------------------------------------------------------------
# In-kernel helpers
# -----------------------------------------------------------------------------
def _sliding_window_max(x, d, axis):
    """m[..., l] = max(x[..., l : l + d]) via cyclic lane shifts (doubling).

    Callers only keep positions whose full window lies inside the tile, so the
    cyclic wrap-around at the tile edge never contaminates a kept position.
    TODO(synk): switch slice+concat to pltpu.roll (XLU slot) for large d.
    """
    if d <= 1:
        return x

    def shift(v, s):                                  # shift(v, s)[..., i] = v[..., i + s]
        lo = [slice(None)] * v.ndim
        hi = [slice(None)] * v.ndim
        lo[axis] = slice(s, None)
        hi[axis] = slice(0, s)
        return jnp.concatenate([v[tuple(lo)], v[tuple(hi)]], axis=axis)

    cover, w = x, 1
    while w < d:
        s = min(w, d - w)
        cover = jnp.maximum(cover, shift(cover, s))
        w += s
    return cover


# -----------------------------------------------------------------------------
# Kernels
# -----------------------------------------------------------------------------
def _kernel_max(x_ref, wft_ref, o_ref, acc_ref, *, lt, valid_len, padded_len):
    # x: (bt, H, lt) NCL tile; running max over L tiles, fused head at the end.
    l_idx = pl.program_id(1)

    @pl.when(l_idx == 0)
    def _init():
        acc_ref[...] = jnp.full_like(acc_ref, -jnp.inf)

    xv = x_ref[...]
    if padded_len > valid_len:                        # mask the L zero-padding
        lane = lax.broadcasted_iota(jnp.int32, xv.shape, 2) + l_idx * lt
        xv = jnp.where(lane < valid_len, xv, -jnp.inf)
    acc_ref[...] = jnp.maximum(acc_ref[...],
                               jnp.max(xv, axis=2).astype(jnp.float32))

    @pl.when(l_idx == pl.num_programs(1) - 1)
    def _fin():
        o_ref[...] = jnp.dot(acc_ref[...].astype(wft_ref.dtype), wft_ref[...],
                             preferred_element_type=jnp.float32)


def _kernel_local(x_ref, wft_ref, o_ref, acc_ref, *, d, lt, valid_len, padded_len):
    # window-max (window d), mean over windows (commutes with the bias-free fused
    # head), so pooling happens first with a running SUM accumulator over L tiles.
    l_idx = pl.program_id(1)

    @pl.when(l_idx == 0)
    def _init():
        acc_ref[...] = jnp.zeros_like(acc_ref)

    xv = x_ref[...]                                   # (bt, H, lt)
    m = _sliding_window_max(xv, d, axis=2)
    lane = lax.broadcasted_iota(jnp.int32, xv.shape, 2) + l_idx * lt
    keep = ((lane % d) == 0) & (lane < valid_len)     # aligned window starts only
    acc_ref[...] += jnp.sum(jnp.where(keep, m, 0).astype(jnp.float32), axis=2)

    @pl.when(l_idx == pl.num_programs(1) - 1)
    def _fin():
        pooled = acc_ref[...] * (float(d) / float(valid_len))    # mean over L/d windows
        o_ref[...] = jnp.dot(pooled.astype(wft_ref.dtype), wft_ref[...],
                             preferred_element_type=jnp.float32)


def _kernel_late(x_ref, wf_ref, o_ref, acc_ref, *, lt, valid_len, padded_len):
    # per-position fused logits, max over positions.  Weight-stationary Wf @ x
    # (no x transpose), one matmul per row, running max over L tiles.
    l_idx = pl.program_id(1)

    @pl.when(l_idx == 0)
    def _init():
        acc_ref[...] = jnp.full_like(acc_ref, -jnp.inf)

    wf = wf_ref[...]                                  # (Npad, H) = padded W2 @ W1
    for r in range(x_ref.shape[0]):                   # static unroll over batch rows
        logits = jnp.dot(wf, x_ref[r], preferred_element_type=jnp.float32)  # (Npad, lt)
        if padded_len > valid_len:
            lane = lax.broadcasted_iota(jnp.int32, logits.shape, 1) + l_idx * lt
            logits = jnp.where(lane < valid_len, logits, -jnp.inf)
        acc_ref[r] = jnp.maximum(acc_ref[r], jnp.max(logits, axis=1))

    @pl.when(l_idx == pl.num_programs(1) - 1)
    def _fin():
        o_ref[...] = acc_ref[...]


def _kernel_slow(x_ref, w1_ref, w2t_ref, o_ref, acc_ref, *, d, lt, valid_len,
                 padded_len):
    # window-max, head_1 per window, max over windows (running, over L tiles),
    # head_2 at the end.  Uses the W1 @ m orientation (no transpose).
    l_idx = pl.program_id(1)

    @pl.when(l_idx == 0)
    def _init():
        acc_ref[...] = jnp.full_like(acc_ref, -jnp.inf)

    w1 = w1_ref[...]                                  # (H, H), untransposed
    base = l_idx * lt
    for r in range(x_ref.shape[0]):                   # static unroll over batch rows
        m = _sliding_window_max(x_ref[r], d, axis=1)  # (H, lt)
        # TODO(synk): downsample m to the lt//d window-start columns before the
        # matmul to cut head_1 FLOPs by d.
        h_t = jnp.dot(w1, m, preferred_element_type=jnp.float32)   # (H, lt)
        pos = lax.broadcasted_iota(jnp.int32, h_t.shape, 1) + base
        keep = ((pos % d) == 0) & (pos < valid_len)
        h_t = jnp.where(keep, h_t, -jnp.inf)
        acc_ref[r] = jnp.maximum(acc_ref[r], jnp.max(h_t, axis=1))

    @pl.when(l_idx == pl.num_programs(1) - 1)
    def _fin():
        o_ref[...] = jnp.dot(acc_ref[...].astype(w2t_ref.dtype), w2t_ref[...],
                             preferred_element_type=jnp.float32)


def _kernel_conv(x_ref, wpack_ref, bias_ref, wft_ref, o_ref,
                 run_max_ref, carry_a0_ref, carry_part_ref, *,
                 lt, valid_len, padded_len):
    # Conv1d(k=3, stride=1, pad=1) over the sequence, chunked over L:
    #   a = x_chunk @ [W0t|W1t|W2t]   (M = lt, K = Cin, N = 3*Cout)
    #   y[l] = a0[l-1] + a1[l] + a2[l+1]
    # running max over chunks, 1-row carries for the cross-chunk taps, then
    # + bias (max(y)+b == max(y+b)) and the fused head.
    l_idx = pl.program_id(1)
    cout = bias_ref.shape[1]

    @pl.when(l_idx == 0)
    def _init():
        run_max_ref[...] = jnp.full_like(run_max_ref, -jnp.inf)
        carry_a0_ref[...] = jnp.zeros_like(carry_a0_ref)         # conv left zero-pad
        carry_part_ref[...] = jnp.full_like(carry_part_ref, -jnp.inf)

    x = x_ref[0]                                                 # (lt, cin)
    a = jnp.dot(x, wpack_ref[...], preferred_element_type=jnp.float32)  # (lt, 3*cout)
    a0 = a[:, :cout]
    a1 = a[:, cout:2 * cout]
    a2 = a[:, 2 * cout:]

    # Complete the deferred last row of the previous chunk (no-op on chunk 0).
    prev_last = carry_part_ref[...] + a2[0:1, :]                 # (1, cout)

    # Rows [0, lt-1) of this chunk are fully formed; row lt-1 is deferred.
    a0_sh = jnp.concatenate([carry_a0_ref[...], a0[:lt - 1, :]], axis=0)
    a2_sh = jnp.concatenate([a2[1:, :], jnp.zeros((1, cout), a.dtype)], axis=0)
    y = a0_sh + a1 + a2_sh                                       # (lt, cout)

    local_row = lax.broadcasted_iota(jnp.int32, y.shape, 0)
    keep = ((local_row + l_idx * lt) < valid_len) & (local_row < lt - 1)
    y = jnp.where(keep, y, -jnp.inf)
    run_max_ref[...] = jnp.maximum(
        run_max_ref[...],
        jnp.maximum(jnp.max(y, axis=0, keepdims=True), prev_last))

    # Carries for the next chunk.
    new_part = a0[lt - 2:lt - 1, :] + a1[lt - 1:lt, :]           # last row minus a2 tap
    carry_a0_ref[...] = a0[lt - 1:lt, :]
    carry_part_ref[...] = jnp.where(l_idx * lt + lt - 1 < valid_len, new_part, -jnp.inf)

    @pl.when(l_idx == pl.num_programs(1) - 1)
    def _fin():
        # The very last row's a2 tap is the conv right zero-pad -> complete with 0.
        pooled = jnp.maximum(run_max_ref[...], carry_part_ref[...]) + bias_ref[...]
        o_ref[0] = jnp.dot(pooled.astype(wft_ref.dtype), wft_ref[...],
                           preferred_element_type=jnp.float32)


# -----------------------------------------------------------------------------
# Wrapper
# -----------------------------------------------------------------------------
def _const_spec(arr):
    # Whole-array block with a constant index map (weights stay resident).
    # TODO(synk): request pipeline_mode=pl.Buffered(1) to drop the second buffer.
    nd = arr.ndim
    return pl.BlockSpec(arr.shape, lambda *_, _nd=nd: (0,) * _nd)


def late_fusion_span_cls_head(features, params, pooling_method, downsample_factor=2,
                              compute_dtype=jnp.bfloat16,
                              vmem_budget_bytes=_DEF_VMEM_BUDGET):
    """features:
         max/late/slow/local : (B, hidden_dim, L)      (PyTorch NCL)
         conv                : (B, L, conv_in_channel)
       returns (B, n_class) float32."""
    w1 = params['w1']
    w2 = params['w2']
    n_class = w2.shape[0]
    npad = _round_up(n_class, 128)                    # lane-dense output / weights
    d = downsample_factor
    elem = jnp.dtype(compute_dtype).itemsize
    cparams = pltpu.CompilerParams(dimension_semantics=("parallel", "arbitrary"))

    if pooling_method in ('max', 'local'):
        B, H, L = features.shape
        if pooling_method == 'local':
            assert L % d == 0
        lane_align = 128 if pooling_method == 'max' else _lcm(128, d)
        lt, lp = _choose_seq_tile(8, H, L, elem, lane_align, vmem_budget_bytes)
        bt, bp = _choose_batch_tile(B, H * lt * elem, vmem_budget_bytes)
        x = features
        if bp != B or lp != L:
            x = jnp.pad(x, ((0, bp - B), (0, 0), (0, lp - L)))
        x = x.astype(compute_dtype)
        # bias-free heads commute with max / mean pooling -> pre-fuse Wf = W2 @ W1
        wft = jnp.pad((w2 @ w1).T, ((0, 0), (0, npad - n_class))).astype(compute_dtype)
        if pooling_method == 'max':
            kernel = functools.partial(_kernel_max, lt=lt, valid_len=L, padded_len=lp)
        else:
            kernel = functools.partial(_kernel_local, d=d, lt=lt, valid_len=L,
                                       padded_len=lp)
        out = pl.pallas_call(
            kernel,
            out_shape=jax.ShapeDtypeStruct((bp, npad), jnp.float32),
            grid_spec=pltpu.PrefetchScalarGridSpec(
                num_scalar_prefetch=0,
                grid=(bp // bt, lp // lt),
                in_specs=[pl.BlockSpec((bt, H, lt), lambda i, l: (i, 0, l)),
                          _const_spec(wft)],
                out_specs=pl.BlockSpec((bt, npad), lambda i, l: (i, 0)),
                scratch_shapes=[pltpu.VMEM((bt, H), jnp.float32)]),
            compiler_params=cparams,
        )(x, wft)
        return out[:B, :n_class]

    if pooling_method in ('late', 'slow'):
        B, H, L = features.shape
        if pooling_method == 'slow':
            assert L % d == 0
        btr = 8                                       # rows per grid step (unrolled)
        lane_align = 128 if pooling_method == 'late' else _lcm(128, d)
        lt, lp = _choose_seq_tile(btr, H, L, elem, lane_align, vmem_budget_bytes)
        bp = _round_up(B, btr)
        x = features
        if bp != B or lp != L:
            x = jnp.pad(x, ((0, bp - B), (0, 0), (0, lp - L)))
        x = x.astype(compute_dtype)
        if pooling_method == 'late':
            wf = jnp.pad(w2 @ w1, ((0, npad - n_class), (0, 0))).astype(compute_dtype)
            weights = (wf,)
            kernel = functools.partial(_kernel_late, lt=lt, valid_len=L, padded_len=lp)
            acc_shape = (btr, npad)
        else:
            w1c = w1.astype(compute_dtype)                           # (H, H)
            w2t = jnp.pad(w2.T, ((0, 0), (0, npad - n_class))).astype(compute_dtype)
            weights = (w1c, w2t)
            kernel = functools.partial(_kernel_slow, d=d, lt=lt, valid_len=L,
                                       padded_len=lp)
            acc_shape = (btr, H)
        out = pl.pallas_call(
            kernel,
            out_shape=jax.ShapeDtypeStruct((bp, npad), jnp.float32),
            grid_spec=pltpu.PrefetchScalarGridSpec(
                num_scalar_prefetch=0,
                grid=(bp // btr, lp // lt),
                in_specs=[pl.BlockSpec((btr, H, lt), lambda i, l: (i, 0, l))]
                         + [_const_spec(w) for w in weights],
                out_specs=pl.BlockSpec((btr, npad), lambda i, l: (i, 0)),
                scratch_shapes=[pltpu.VMEM(acc_shape, jnp.float32)]),
            compiler_params=cparams,
        )(x, *weights)
        return out[:B, :n_class]

    if pooling_method == 'conv':
        B, L, cin = features.shape
        cw, cb = params['conv_w'], params['conv_b']       # (Cout, Cin, 3), (Cout,)
        cout = cw.shape[0]
        # live per chunk ~ 2*lt*cin*elem (x, double-buffered) + lt*(3+1)*cout*4 (a, y)
        per_row = 2 * cin * elem + 16 * cout
        lt = max(8, _round_down(vmem_budget_bytes // per_row, 8))
        lt = min(lt, _round_up(L, 8))
        lp = _round_up(L, lt)
        x = features
        if lp != L:
            x = jnp.pad(x, ((0, 0), (0, lp - L), (0, 0)))
        x = x.astype(compute_dtype)
        wpack = jnp.concatenate([cw[:, :, 0].T, cw[:, :, 1].T, cw[:, :, 2].T],
                                axis=1).astype(compute_dtype)         # (Cin, 3*Cout)
        bias = cb.reshape(1, cout).astype(jnp.float32)
        wft = jnp.pad((w2 @ w1).T, ((0, 0), (0, npad - n_class))).astype(compute_dtype)
        kernel = functools.partial(_kernel_conv, lt=lt, valid_len=L, padded_len=lp)
        out = pl.pallas_call(
            kernel,
            out_shape=jax.ShapeDtypeStruct((B, 1, npad), jnp.float32),
            grid_spec=pltpu.PrefetchScalarGridSpec(
                num_scalar_prefetch=0,
                grid=(B, lp // lt),
                in_specs=[pl.BlockSpec((1, lt, cin), lambda b, l: (b, l, 0)),
                          _const_spec(wpack), _const_spec(bias), _const_spec(wft)],
                out_specs=pl.BlockSpec((1, 1, npad), lambda b, l: (b, 0, 0)),
                scratch_shapes=[pltpu.VMEM((1, cout), jnp.float32),
                                pltpu.VMEM((1, cout), jnp.float32),
                                pltpu.VMEM((1, cout), jnp.float32)]),
            compiler_params=cparams,
        )(x, wpack, bias, wft)
        return out[:, 0, :n_class]

    raise ValueError(pooling_method)


# -----------------------------------------------------------------------------
# Deterministic parameter init (shapes match the PyTorch __init__)
# -----------------------------------------------------------------------------
def init_params(key, hidden_dim, n_class, conv_in_channel=0):
    ks = jax.random.split(key, 4)

    def xavier(k, shape):
        bound = float(np.sqrt(6.0 / (shape[0] + shape[1])))
        return jax.random.uniform(k, shape, jnp.float32, -bound, bound)

    if conv_in_channel != 0:
        c = 128                                            # default_conv_channel
        fan_in = conv_in_channel * 3
        cb = float(1.0 / np.sqrt(fan_in))
        conv_w = jax.random.uniform(ks[0], (c, conv_in_channel, 3),
                                    jnp.float32, -cb, cb)
        conv_b = jax.random.uniform(ks[1], (c,), jnp.float32, -cb, cb)
        return dict(conv_w=conv_w, conv_b=conv_b,
                    w1=xavier(ks[2], (c, c)),
                    w2=xavier(ks[3], (n_class, c)))
    return dict(w1=xavier(ks[2], (hidden_dim, hidden_dim)),
                w2=xavier(ks[3], (n_class, hidden_dim)))


# -----------------------------------------------------------------------------
# Pure-JAX reference (mirrors the PyTorch forward) for correctness checking
# -----------------------------------------------------------------------------
def ref_forward(features, params, pooling_method, d=2):
    w1, w2 = params['w1'], params['w2']
    if pooling_method == 'max':
        f = jnp.max(features, axis=2)                      # (B, H)
        return f @ w1.T @ w2.T
    if pooling_method == 'late':
        f = jnp.transpose(features, (0, 2, 1))             # (B, L, H)
        logits = f @ w1.T @ w2.T                           # (B, L, n_class)
        return jnp.max(logits, axis=1)
    if pooling_method == 'slow':
        B, H, L = features.shape
        f = jnp.max(features.reshape(B, H, L // d, d), axis=3)      # (B, H, L//d)
        h = jnp.transpose(f, (0, 2, 1)) @ w1.T                      # (B, L//d, H)
        feat = jnp.max(h, axis=1)                                   # (B, H)
        return feat @ w2.T
    if pooling_method == 'local':
        B, H, L = features.shape
        f = jnp.max(features.reshape(B, H, L // d, d), axis=3)      # (B, H, L//d)
        logits = jnp.transpose(f, (0, 2, 1)) @ w1.T @ w2.T          # (B, L//d, n_class)
        return jnp.mean(logits, axis=1)
    if pooling_method == 'conv':
        xp = jnp.transpose(features, (0, 2, 1))                     # (B, Cin, L)
        y = lax.conv_general_dilated(
            xp, params['conv_w'], window_strides=(1,), padding=((1, 1),),
            dimension_numbers=('NCH', 'OIH', 'NCH'))
        y = y + params['conv_b'][None, :, None]                     # (B, Cout, L)
        f = jnp.max(y, axis=2)                                      # (B, Cout)
        return f @ w1.T @ w2.T
    raise ValueError(pooling_method)


def _check(features, params, method, d, compute_dtype, budget, rtol, atol, tag):
    out = late_fusion_span_cls_head(features, params, method, downsample_factor=d,
                                    compute_dtype=compute_dtype,
                                    vmem_budget_bytes=budget)
    out = np.asarray(jax.block_until_ready(out))
    ref = np.asarray(jax.block_until_ready(ref_forward(features, params, method, d=d)))
    if out.shape != ref.shape:
        print(f"MISMATCH ({tag}) method={method}: shape {out.shape} vs {ref.shape}")
        return False
    if not np.allclose(out, ref, rtol=rtol, atol=atol):
        err = float(np.max(np.abs(out - ref)))
        print(f"MISMATCH ({tag}) method={method}: max abs err {err:.4e}")
        return False
    return True


# -----------------------------------------------------------------------------
if __name__ == "__main__":
    key = jax.random.PRNGKey(0)
    k1, k2, k3, k4, k5, k6 = jax.random.split(key, 6)

    B, H, L, N_CLASS, CONV_IN, D = 2, 32, 16, 8, 32, 2
    feat = jax.random.normal(k1, (B, H, L), jnp.float32)        # (B, hidden, L)
    featc = jax.random.normal(k2, (B, L, CONV_IN), jnp.float32)  # (B, L, conv_in)
    prm = init_params(k3, H, N_CLASS, conv_in_channel=0)
    prmc = init_params(k4, H, N_CLASS, conv_in_channel=CONV_IN)

    ok = True
    # 1) exact-semantics check: f32 compute, small shapes, single-tile path.
    for method in ('max', 'late', 'slow', 'local', 'conv'):
        f, p = (featc, prmc) if method == 'conv' else (feat, prm)
        ok &= _check(f, p, method, D, jnp.float32, _DEF_VMEM_BUDGET,
                     1e-4, 1e-4, "f32 small")

    # 2) optimized path: bf16 compute, forced tiny VMEM budget so the batch- and
    #    L-tiled running-accumulator / carry / masking paths are exercised.
    B2, L2 = 10, 200
    feat2 = jax.random.normal(k5, (B2, H, L2), jnp.float32)
    featc2 = jax.random.normal(k6, (B2, L2, CONV_IN), jnp.float32)
    for method in ('max', 'late', 'slow', 'local', 'conv'):
        f, p = (featc2, prmc) if method == 'conv' else (feat2, prm)
        ok &= _check(f, p, method, D, jnp.bfloat16, 16 * 1024,
                     5e-2, 5e-2, "bf16 tiled")

    if ok:
        print("KERNEL_OK")
</pallas_src>

<mosaic_0001>
module attributes {stable_mosaic.version = 11 : i64} {
  func.func @_kernel_max(%arg0: i32, %arg1: i32, %arg2: memref<8x32x16xf32, #tpu.memory_space<vmem>>, %arg3: memref<32x128xf32, #tpu.memory_space<vmem>>, %arg4: memref<8x128xf32, #tpu.memory_space<vmem>>, %arg5: memref<8x32xf32, #tpu.memory_space<vmem>>) attributes {dimension_semantics = [#tpu.dimension_semantics<parallel>, #tpu.dimension_semantics<arbitrary>], iteration_bounds = array<i64: 1, 1>, scalar_prefetch = 0 : i64, scratch_operands = 1 : i64, tpu.core_type = #tpu.core_type<tc>, window_params = [{transform_indices = @transform_0, window_bounds = array<i64: 8, 32, 16>}, {pipeline_mode = #tpu.pipeline_mode<synchronous>, transform_indices = @transform_1, window_bounds = array<i64: 32, 128>}, {transform_indices = @transform_2, window_bounds = array<i64: 8, 128>}]} {
    %c0_i32 = arith.constant 0 : i32
    %0 = arith.cmpi eq, %arg1, %c0_i32 : i32
    %1 = arith.extui %0 : i1 to i32
    %c0_i32_0 = arith.constant 0 : i32
    %2 = arith.cmpi ne, %1, %c0_i32_0 : i32
    scf.if %2 {
      %cst_9 = arith.constant 0xFF800000 : f32
      %11 = vector.broadcast %cst_9 : f32 to vector<8x32xf32>
      %c0_10 = arith.constant 0 : index
      %c0_11 = arith.constant 0 : index
      %12 = vector.load %arg5[%c0_10, %c0_11] : memref<8x32xf32, #tpu.memory_space<vmem>>, vector<8x32xf32>
      tpu.vector_store %arg5[%c0_10, %c0_11], %11 {strides = array<i32>} : memref<8x32xf32, #tpu.memory_space<vmem>>, vector<8x32xf32>,
    } else {
    }
    %c0 = arith.constant 0 : index
    %c0_1 = arith.constant 0 : index
    %c0_2 = arith.constant 0 : index
    %3 = vector.load %arg2[%c0, %c0_1, %c0_2] : memref<8x32x16xf32, #tpu.memory_space<vmem>>, vector<8x32x16xf32>
    %c0_3 = arith.constant 0 : index
    %c0_4 = arith.constant 0 : index
    %4 = vector.load %arg5[%c0_3, %c0_4] : memref<8x32xf32, #tpu.memory_space<vmem>>, vector<8x32xf32>
    %cst = arith.constant dense<0xFF800000> : vector<8x32xf32>
    %5 = vector.multi_reduction <maximumf>, %3, %cst [2] : vector<8x32x16xf32> to vector<8x32xf32>
    %6 = arith.maximumf %4, %5 : vector<8x32xf32>
    %c0_5 = arith.constant 0 : index
    %c0_6 = arith.constant 0 : index
    %7 = vector.load %arg5[%c0_5, %c0_6] : memref<8x32xf32, #tpu.memory_space<vmem>>, vector<8x32xf32>
    tpu.vector_store %arg5[%c0_5, %c0_6], %6 {strides = array<i32>} : memref<8x32xf32, #tpu.memory_space<vmem>>, vector<8x32xf32>,
    %c0_i32_7 = arith.constant 0 : i32
    %8 = arith.cmpi eq, %arg1, %c0_i32_7 : i32
    %9 = arith.extui %8 : i1 to i32
    %c0_i32_8 = arith.constant 0 : i32
    %10 = arith.cmpi ne, %9, %c0_i32_8 : i32
    scf.if %10 {
      %c0_9 = arith.constant 0 : index
      %c0_10 = arith.constant 0 : index
      %11 = vector.load %arg5[%c0_9, %c0_10] : memref<8x32xf32, #tpu.memory_space<vmem>>, vector<8x32xf32>
      %c0_11 = arith.constant 0 : index
      %c0_12 = arith.constant 0 : index
      %12 = vector.load %arg3[%c0_11, %c0_12] : memref<32x128xf32, #tpu.memory_space<vmem>>, vector<32x128xf32>
      %cst_13 = arith.constant dense<0.000000e+00> : vector<8x128xf32>
      %13 = tpu.matmul %11, %12, %cst_13 {dimension_numbers = #tpu.dot_dimension_numbers<[1], [0], [0], [1], [0, 0, 1, 1], [], []>} : vector<8x32xf32>, vector<32x128xf32>, vector<8x128xf32> -> vector<8x128xf32>
      %c0_14 = arith.constant 0 : index
      %c0_15 = arith.constant 0 : index
      %14 = vector.load %arg4[%c0_14, %c0_15] : memref<8x128xf32, #tpu.memory_space<vmem>>, vector<8x128xf32>
      tpu.vector_store %arg4[%c0_14, %c0_15], %13 {strides = array<i32>} : memref<8x128xf32, #tpu.memory_space<vmem>>, vector<8x128xf32>,
    } else {
    }
    return
  }
  func.func @transform_0(%arg0: i32, %arg1: i32) -> (i32, i32, i32) {
    %c0_i32 = arith.constant 0 : i32
    %c0_i32_0 = arith.constant 0 : i32
    return %arg0, %c0_i32, %arg1 : i32, i32, i32
  }
  func.func @transform_1(%arg0: i32, %arg1: i32) -> (i32, i32) {
    %c0_i32 = arith.constant 0 : i32
    %c0_i32_0 = arith.constant 0 : i32
    %c0_i32_1 = arith.constant 0 : i32
    return %c0_i32, %c0_i32_0 : i32, i32
  }
  func.func @transform_2(%arg0: i32, %arg1: i32) -> (i32, i32) {
    %c0_i32 = arith.constant 0 : i32
    %c0_i32_0 = arith.constant 0 : i32
    return %arg0, %c0_i32 : i32, i32
  }
}

</mosaic_0001>

<bundles_post_ra>
// kernel: tpu_custom_call.1
= control target key start
LH: loop header
LB: loop body
LE: loop exit
PB: predicated region body
PF: predicated region fallthrough
CT: control target
= control target key end

     0   :  { %vm51_vm0 = vcmask 130048   ;;  %s787_s0 = inlined_call_operand.vmem [shape: f32[8,32,16], index: 0, kind: input, shape index: {}]   ;;  %s788_s1 = inlined_call_operand.vmem [shape: f32[32,128], index: 1, kind: input, shape index: {}]   ;;  %s789_s2 = inlined_call_operand.hbm [shape: f32[8,128], index: 2, kind: output, shape index: {}]  }
   0x1   :  { %v22_v0 = vld [vmem:[%s787_s0 + $0x20] sm:$0xff]  ;;  %v23_v2 = vld [vmem:[%s787_s0 + $0x28] sm:$0xff]  ;;  %v24_v8 = vld [vmem:[%s787_s0 + $0x30] sm:$0xff] }
   0x2   :  { %v18_v1 = vld [vmem:[%s787_s0] sm:$0xff]  ;;  %v64_v3 = vsel %vm51_vm0, %v22_v0, -inf  ;;  %v19_v5 = vld [vmem:[%s787_s0 + $0x8] sm:$0xff]  ;;  %v67_v6 = vsel %vm51_vm0, %v23_v2, -inf  ;;  %v20_v9 = vld [vmem:[%s787_s0 + $0x10] sm:$0xff]  ;;  %v70_v10 = vsel %vm51_vm0, %v24_v8, -inf }
   0x3   :  { %v52_v4 = vsel %vm51_vm0, %v18_v1, -inf  ;;  %65 = vmax.xlane.f32.xlu1 %v64_v3  ;;  %v55_v7 = vsel %vm51_vm0, %v19_v5, -inf  ;;  %v58_v11 = vsel %vm51_vm0, %v20_v9, -inf  ;;  %v27_v12 = vld [vmem:[%s787_s0 + $0x48] sm:$0xff]  ;;  %v26_v13 = vld [vmem:[%s787_s0 + $0x40] sm:$0xff] }
   0x4   :  { %53 = vmax.xlane.f32.xlu0 %v52_v4  ;;  %v79_v14 = vsel %vm51_vm0, %v27_v12, -inf  ;;  %v76_v15 = vsel %vm51_vm0, %v26_v13, -inf }
   0x7   :  { %68 = vmax.xlane.f32.xlu1 %v67_v6 }
   0x8   :  { %56 = vmax.xlane.f32.xlu0 %v55_v7 }
   0xb   :  { %71 = vmax.xlane.f32.xlu1 %v70_v10 }
   0xc   :  { %59 = vmax.xlane.f32.xlu0 %v58_v11 }
   0xd   :  { %7 = vsyncpa [#allocation4], 0  ;;  %v25_v16 = vld [vmem:[%s787_s0 + $0x38] sm:$0xff]  ;;  %v30_v20 = vld [vmem:[%s787_s0 + $0x60] sm:$0xff]  ;;  %vm16_vm1 = vcmask 261120   ;;  %v506_v0 = vmov -inf  }
   0xe   :  { %v21_v17 = vld [vmem:[%s787_s0 + $0x18] sm:$0xff]  ;;  %v73_v18 = vsel %vm51_vm0, %v25_v16, -inf  ;;  %v28_v21 = vld [vmem:[%s787_s0 + $0x50] sm:$0xff]  ;;  %v88_v22 = vsel %vm51_vm0, %v30_v20, -inf  ;;  %v31_v25 = vld [vmem:[%s787_s0 + $0x68] sm:$0xff]  ;;  %17 = vst.msk [vmem:[#allocation2] sm:$0xff] %vm16_vm1, %v506_v0 }
   0xf   :  { %80 = vmax.xlane.f32.xlu1 %v79_v14  ;;  %v61_v19 = vsel %vm51_vm0, %v21_v17, -inf  ;;  %v82_v23 = vsel %vm51_vm0, %v28_v21, -inf  ;;  %v29_v24 = vld [vmem:[%s787_s0 + $0x58] sm:$0xff]  ;;  %v91_v27 = vsel %vm51_vm0, %v31_v25, -inf  ;;  %v34_v28 = vld [vmem:[%s787_s0 + $0x80] sm:$0xff]  ;;  %v32_v29 = vld [vmem:[%s787_s0 + $0x70] sm:$0xff]  ;;  %v180_v25 = vlaneseq }
  0x10   :  { %77 = vmax.xlane.f32.xlu0 %v76_v15  ;;  %v85_v26 = vsel %vm51_vm0, %v29_v24, -inf  ;;  %v100_v30 = vsel %vm51_vm0, %v34_v28, -inf  ;;  %v94_v31 = vsel %vm51_vm0, %v32_v29, -inf  ;;  %v33_v32 = vld [vmem:[%s787_s0 + $0x78] sm:$0xff]  ;;  %v35_v33 = vld [vmem:[%s787_s0 + $0x88] sm:$0xff]  ;;  %v38_v36 = vld [vmem:[%s787_s0 + $0xa0] sm:$0xff] }
  0x11   :  { %v97_v34 = vsel %vm51_vm0, %v33_v32, -inf  ;;  %v103_v35 = vsel %vm51_vm0, %v35_v33, -inf  ;;  %v36_v37 = vld [vmem:[%s787_s0 + $0x90] sm:$0xff]  ;;  %v112_v38 = vsel %vm51_vm0, %v38_v36, -inf  ;;  %v37_v40 = vld [vmem:[%s787_s0 + $0x98] sm:$0xff]  ;;  %v39_v41 = vld [vmem:[%s787_s0 + $0xa8] sm:$0xff] }
  0x12   :  { %v106_v39 = vsel %vm51_vm0, %v36_v37, -inf  ;;  %v109_v42 = vsel %vm51_vm0, %v37_v40, -inf  ;;  %v115_v43 = vsel %vm51_vm0, %v39_v41, -inf  ;;  %v42_v44 = vld [vmem:[%s787_s0 + $0xc0] sm:$0xff]  ;;  %v40_v45 = vld [vmem:[%s787_s0 + $0xb0] sm:$0xff]  ;;  %v41_v48 = vld [vmem:[%s787_s0 + $0xb8] sm:$0xff] }
  0x13   :  { %74 = vmax.xlane.f32.xlu1 %v73_v18  ;;  %v124_v46 = vsel %vm51_vm0, %v42_v44, -inf  ;;  %v118_v47 = vsel %vm51_vm0, %v40_v45, -inf  ;;  %v43_v49 = vld [vmem:[%s787_s0 + $0xc8] sm:$0xff]  ;;  %v121_v50 = vsel %vm51_vm0, %v41_v48, -inf  ;;  %v46_v52 = vld [vmem:[%s787_s0 + $0xe0] sm:$0xff]  ;;  %v44_v53 = vld [vmem:[%s787_s0 + $0xd0] sm:$0xff] }
  0x14   :  { %62 = vmax.xlane.f32.xlu0 %v61_v19  ;;  %v127_v51 = vsel %vm51_vm0, %v43_v49, -inf  ;;  %v136_v54 = vsel %vm51_vm0, %v46_v52, -inf  ;;  %v130_v55 = vsel %vm51_vm0, %v44_v53, -inf  ;;  %v45_v56 = vld [vmem:[%s787_s0 + $0xd8] sm:$0xff]  ;;  %v47_v57 = vld [vmem:[%s787_s0 + $0xe8] sm:$0xff]  ;;  %v48_v60 = vld [vmem:[%s787_s0 + $0xf0] sm:$0xff] }
  0x15   :  { %v133_v58 = vsel %vm51_vm0, %v45_v56, -inf  ;;  %v139_v59 = vsel %vm51_vm0, %v47_v57, -inf  ;;  %v49_v61 = vld [vmem:[%s787_s0 + $0xf8] sm:$0xff]  ;;  %v142_v62 = vsel %vm51_vm0, %v48_v60, -inf  ;;  %v362_v1 = vld [vmem:[%s788_s1] sm:$0xff]  ;;  %v363_v2 = vld [vmem:[%s788_s1 + $0x8] sm:$0xff] }
  0x16   :  { %v145_v63 = vsel %vm51_vm0, %v49_v61, -inf  ;;  %v364_v3 = vld [vmem:[%s788_s1 + $0x10] sm:$0xff]  ;;  %v507_v4 = vmov 0.0|0.0   ;;  %v472_v5 = vpack.c.bf16 %v363_v2, %v362_v1  ;;  %v365_v6 = vld [vmem:[%s788_s1 + $0x18] sm:$0xff]  ;;  %vm508_vm2 = vmmov 0   ;;  %s510_s1 = smov [#allocation3]  }
  0x17   :  { %89 = vmax.xlane.f32.xlu1 %v88_v22  ;;  %471 = vmatprep.subr.bf16.mxu0 %v507_v4  ;;  %v509_v7 = vmov 0.0   ;;  %v475_v8 = vpack.c.bf16 %v365_v6, %v364_v3  ;;  %v181_v28 = vand.u32 127, %v180_v25  ;;  %v183_v32 = vshrl.u32 %v180_v25, 7  ;;  %s446_s24 = sshll.u32 %s510_s1, 4  ;;  %s447_s24 = int_to_ptr.vmem [resolvable:$true] %s446_s24 }
  0x18   :  { %83 = vmax.xlane.f32.xlu0 %v82_v23  ;;  %468 = vmatprep.mubr.msk.f32.mxu0 %vm508_vm2, %v509_v7  ;;  %vm191_vm3 = vcmask 130112   ;;  %vm198_vm4 = vcmask 195712   ;;  %vm205_vm5 = vcmask 261312   ;;  %vm340_vm6 = vcmask 1041409   ;;  %s482_s25 = scalar_lea.vmem %s447_s24, 128  ;;  %p487_p1 = scmp.lt.s32.totalorder %s447_s24, %s447_s24 }
  0x19   :  { %473 = vmatpush3.bf16.msra.mxu0 %v472_v5  ;;  %v193_v33 = vadd.s32 4294967280, %v181_v28  ;;  %vm342_vm7 = vcmask 1042434   ;;  %vm344_vm8 = vcmask 1043459   ;;  %vm346_vm9 = vcmask 1044484   ;;  %p483_p0 = scmp.ne.s32.totalorder %s447_s24, %s482_s25  ;;  %p488_p2 = scmp.lt.s32.totalorder %s482_s25, %s482_s25 }
  0x1a   :  { %474 = vmatprep.subr.bf16.mxu0 %v507_v4  ;;  %vm348_vm10 = vcmask 1045509   ;;  %vm350_vm11 = vcmask 1046534   ;;  %vm352_vm12 = vcmask 1047559  }
  0x1b   :  { %86 = vmax.xlane.f32.xlu1 %v85_v26  ;;  %p489_p3 = por %p488_p2, %p487_p1 }
  0x1c   :  { %92 = vmax.xlane.f32.xlu0 %v91_v27 }
  0x1d   :  { %476 = vmatpush3.bf16.msra.mxu0 %v475_v8  ;;  %p490_p4 = pnand %p489_p3, %p483_p0 }
  0x1f   :  { %101 = vmax.xlane.f32.xlu1 %v100_v30 }
  0x20   :  { %95 = vmax.xlane.f32.xlu0 %v94_v31  ;;  %v186_v31 = vadd.s32 4294967288, %v181_v28 }
  0x22   :  { %v687_v37 = vsub.s32 %v186_v31, %v183_v32 }
  0x23   :  { %98 = vmax.xlane.f32.xlu1 %v97_v34  ;;  %v200_v34 = vadd.s32 4294967272, %v181_v28 }
  0x24   :  { %104 = vmax.xlane.f32.xlu0 %v103_v35 }
  0x25   :  { %v693_v40 = vsub.s32 %v200_v34, %v183_v32 }
  0x27   :  { %113 = vmax.xlane.f32.xlu1 %v112_v38  ;;  %v689_v38 = vsub.s32 %v181_v28, %v183_v32 }
  0x28   :  { %107 = vmax.xlane.f32.xlu0 %v106_v39  ;;  %v691_v39 = vsub.s32 %v193_v33, %v183_v32 }
  0x2b   :  { %110 = vmax.xlane.f32.xlu1 %v109_v42 }
  0x2c   :  { %116 = vmax.xlane.f32.xlu0 %v115_v43 }
  0x2f   :  { %125 = vmax.xlane.f32.xlu1 %v124_v46 }
  0x30   :  { %119 = vmax.xlane.f32.xlu0 %v118_v47 }
  0x33   :  { %122 = vmax.xlane.f32.xlu1 %v121_v50 }
  0x34   :  { %128 = vmax.xlane.f32.xlu0 %v127_v51 }
  0x37   :  { %137 = vmax.xlane.f32.xlu1 %v136_v54 }
  0x38   :  { %131 = vmax.xlane.f32.xlu0 %v130_v55 }
  0x3b   :  { %134 = vmax.xlane.f32.xlu1 %v133_v58 }
  0x3c   :  { %140 = vmax.xlane.f32.xlu0 %v139_v59 }
  0x3f   :  { %146 = vmax.xlane.f32.xlu1 %v145_v63 }
  0x40   :  { %143 = vmax.xlane.f32.xlu0 %v142_v62 }
  0x90   :  { %v66_v9 = vpop.xlane.xlu1 %65 }
  0x91   :  { %v54_v10 = vpop.xlane.xlu0 %53  ;;  %v210_v45 = vrot.slane %v66_v9, %v689_v38 }
  0x92   :  { %v185_v46 = vrot.slane %v54_v10, %v689_v38 }
  0x94   :  { %v69_v11 = vpop.xlane.xlu1 %68 }
  0x95   :  { %v57_v12 = vpop.xlane.xlu0 %56  ;;  %v214_v43 = vrot.slane %v69_v11, %v687_v37 }
  0x96   :  { %v190_v44 = vrot.slane %v57_v12, %v687_v37 }
  0x97   :  { %v215_v56 = vsel %vm191_vm3, %v214_v43, %v210_v45 }
  0x98   :  { %v72_v13 = vpop.xlane.xlu1 %71  ;;  %v192_v57 = vsel %vm191_vm3, %v190_v44, %v185_v46 }
  0x99   :  { %v60_v14 = vpop.xlane.xlu0 %59  ;;  %v219_v47 = vrot.slane %v72_v13, %v691_v39 }
  0x9a   :  { %v197_v48 = vrot.slane %v60_v14, %v691_v39 }
  0x9b   :  { %v220_v59 = vsel %vm198_vm4, %v219_v47, %v215_v56 }
  0x9c   :  { %v81_v15 = vpop.xlane.xlu1 %80  ;;  %v199_v60 = vsel %vm198_vm4, %v197_v48, %v192_v57 }
  0x9d   :  { %v78_v16 = vpop.xlane.xlu0 %77  ;;  %v233_v49 = vrot.slane %v81_v15, %v687_v37 }
  0x9e   :  { %v229_v50 = vrot.slane %v78_v16, %v689_v38 }
  0xa0   :  { %v75_v17 = vpop.xlane.xlu1 %74  ;;  %v234_v61 = vsel %vm191_vm3, %v233_v49, %v229_v50  ;;  %v50_v49 = vld [vmem:[#allocation2] sm:$0xff] }
  0xa1   :  { %v63_v18 = vpop.xlane.xlu0 %62  ;;  %v224_v51 = vrot.slane %v75_v17, %v693_v40 }
  0xa2   :  { %v204_v52 = vrot.slane %v63_v18, %v693_v40 }
  0xa3   :  { %v225_v62 = vsel %vm205_vm5, %v224_v51, %v220_v59 }
  0xa4   :  { %v667_v19 = vpop.xlane.xlu1 %89  ;;  %v206_v63 = vsel %vm205_vm5, %v204_v52, %v199_v60 }
  0xa5   :  { %v84_v20 = vpop.xlane.xlu0 %83  ;;  %v248_v3 = vrot.slane %v667_v19, %v689_v38 }
  0xa6   :  { %v238_v55 = vrot.slane %v84_v20, %v691_v39 }
  0xa8   :  { %v87_v21 = vpop.xlane.xlu1 %86  ;;  %v239_v4 = vsel %vm198_vm4, %v238_v55, %v234_v61 }
  0xa9   :  { %v669_v22 = vpop.xlane.xlu0 %92  ;;  %v243_v58 = vrot.slane %v87_v21, %v693_v40 }
  0xaa   :  { %v252_v0 = vrot.slane %v669_v22, %v687_v37 }
  0xab   :  { %v244_v7 = vsel %vm205_vm5, %v243_v58, %v239_v4 }
  0xac   :  { %v671_v23 = vpop.xlane.xlu1 %101  ;;  %v253_v15 = vsel %vm191_vm3, %v252_v0, %v248_v3 }
  0xad   :  { %v673_v24 = vpop.xlane.xlu0 %95  ;;  %v267_v11 = vrot.slane %v671_v23, %v689_v38 }
  0xae   :  { %v257_v5 = vrot.slane %v673_v24, %v691_v39 }
  0xb0   :  { %v675_v26 = vpop.xlane.xlu1 %98  ;;  %v258_v21 = vsel %vm198_vm4, %v257_v5, %v253_v15 }
  0xb1   :  { %v677_v27 = vpop.xlane.xlu0 %104  ;;  %v262_v8 = vrot.slane %v675_v26, %v693_v40 }
  0xb2   :  { %v271_v6 = vrot.slane %v677_v27, %v687_v37 }
  0xb3   :  { %v263_v25 = vsel %vm205_vm5, %v262_v8, %v258_v21 }
  0xb4   :  { %v679_v29 = vpop.xlane.xlu1 %113  ;;  %v272_v22 = vsel %vm191_vm3, %v271_v6, %v267_v11 }
  0xb5   :  { %v681_v30 = vpop.xlane.xlu0 %107  ;;  %v286_v16 = vrot.slane %v679_v29, %v689_v38  ;;  %v341_v29 = vsel %vm340_vm6, %v225_v62, %v206_v63 }
  0xb6   :  { %v276_v9 = vrot.slane %v681_v30, %v691_v39  ;;  %v343_v33 = vsel %vm342_vm7, %v244_v7, %v341_v29 }
  0xb8   :  { %v683_v35 = vpop.xlane.xlu1 %110  ;;  %v277_v26 = vsel %vm198_vm4, %v276_v9, %v272_v22 }
  0xb9   :  { %v685_v36 = vpop.xlane.xlu0 %116  ;;  %v281_v12 = vrot.slane %v683_v35, %v693_v40 }
  0xba   :  { %v290_v10 = vrot.slane %v685_v36, %v687_v37 }
  0xbb   :  { %v282_v30 = vsel %vm205_vm5, %v281_v12, %v277_v26 }
  0xbc   :  { %v695_v41 = vpop.xlane.xlu1 %125  ;;  %v291_v27 = vsel %vm191_vm3, %v290_v10, %v286_v16 }
  0xbd   :  { %v697_v42 = vpop.xlane.xlu0 %119  ;;  %v305_v23 = vrot.slane %v695_v41, %v689_v38 }
  0xbe   :  { %v295_v13 = vrot.slane %v697_v42, %v691_v39 }
  0xc0   :  { %v123_v53 = vpop.xlane.xlu1 %122  ;;  %v296_v31 = vsel %vm198_vm4, %v295_v13, %v291_v27 }
  0xc1   :  { %v129_v54 = vpop.xlane.xlu0 %128  ;;  %v300_v17 = vrot.slane %v123_v53, %v693_v40 }
  0xc2   :  { %v309_v14 = vrot.slane %v129_v54, %v687_v37 }
  0xc3   :  { %v301_v34 = vsel %vm205_vm5, %v300_v17, %v296_v31 }
  0xc4   :  { %v138_v1 = vpop.xlane.xlu1 %137  ;;  %v310_v32 = vsel %vm191_vm3, %v309_v14, %v305_v23 }
  0xc5   :  { %v132_v2 = vpop.xlane.xlu0 %131  ;;  %v324_v35 = vrot.slane %v138_v1, %v689_v38 }
  0xc6   :  { %v314_v18 = vrot.slane %v132_v2, %v691_v39 }
  0xc8   :  { %v135_v19 = vpop.xlane.xlu1 %134  ;;  %v315_v36 = vsel %vm198_vm4, %v314_v18, %v310_v32 }
  0xc9   :  { %v141_v20 = vpop.xlane.xlu0 %140  ;;  %v319_v24 = vrot.slane %v135_v19, %v693_v40 }
  0xca   :  { %v328_v28 = vrot.slane %v141_v20, %v687_v37  ;;  %v345_v37 = vsel %vm344_vm8, %v263_v25, %v343_v33 }
  0xcb   :  { %v320_v43 = vsel %vm205_vm5, %v319_v24, %v315_v36  ;;  %v347_v46 = vsel %vm346_vm9, %v282_v30, %v345_v37 }
  0xcc   :  { %v147_v42 = vpop.xlane.xlu1 %146  ;;  %v329_v47 = vsel %vm191_vm3, %v328_v28, %v324_v35  ;;  %v349_v48 = vsel %vm348_vm10, %v301_v34, %v347_v46 }
  0xcd   :  { %v144_v41 = vpop.xlane.xlu0 %143  ;;  %v338_v45 = vrot.slane %v147_v42, %v693_v40  ;;  %v351_v50 = vsel %vm350_vm11, %v320_v43, %v349_v48 }
  0xce   :  { %v333_v44 = vrot.slane %v144_v41, %v691_v39 }
  0xd0   :  { %v334_v38 = vsel %vm198_vm4, %v333_v44, %v329_v47 }
  0xd1   :  { %v339_v51 = vsel %vm205_vm5, %v338_v45, %v334_v38 }
  0xd2   :  { %v353_v52 = vsel %vm352_vm12, %v339_v51, %v351_v50 }
  0xd3   :  { %v355_v53 = vmax.f32 %v50_v49, %v353_v52 }
  0xd5   :  { %357 = vst.msk [vmem:[#allocation2] sm:$0xff] %vm16_vm1, %v355_v53 }
  0xdc   :  { %v361_v39 = vld [vmem:[#allocation2] sm:$0xff] }
  0xdd   :  { %469 = vmatmul.mubr.msk.f32.vlgmr.msra.gmra.mrb[0].mxu0 %vm16_vm1, %v361_v39 }
 0x1b0   :  { %v435_v40 = vpop.f32.mrb[0].mxu0 }
 0x1b1   :  { %439 = vst [vmem:[#allocation3] sm:$0xff] %v435_v40  ;;  %v470_v54 = vpop.f32.mrb[1].mxu0 }
 0x1b2   :  { %493 = shalt.err (!%p490_p4)
}
 0x1b3   :  { %s494_s28 = scalar_lea.hbm %s789_s2, 128 }
 0x1b4   :  { %p495_p5 = scmp.ne.s32.totalorder %s789_s2, %s494_s28  ;;  %p498_p6 = scmp.lt.u32.totalorder %s494_s28, %s789_s2 }
 0x1b6   :  { %p500_p7 = pnand %p498_p6, %p495_p5 }
 0x1b8   :  { %503 = shalt.err (!%p500_p7)
}
 0x1b9   :  { %449 = dma.vmem_to_hbm [thread:$0]  %s447_s24, 128, %s789_s2, [#allocation4]  }
 0x1ba   :  { %504 = dma.done.wait [#allocation4], 128  }
 0x1bb   :  { %505 = vsyncadd [#allocation4], 4294967168 }
 0x1bc   :  { %453 = vsyncpa [#allocation4], 1 }

</bundles_post_ra>
